<compile_context>
chip_gen: v7x
topology: tpu7x:2x2x1
jax: 0.10.0
libtpu: 0.0.40
codegen_flags: <defaults>
</compile_context>

<pallas_src>
import functools

import jax
import jax.numpy as jnp
import numpy as np
from jax import lax
from jax.experimental import pallas as pl
from jax.experimental.pallas import tpu as pltpu


def _round_up(v, m):
    return (v + m - 1) // m * m


def _vmem_cap_bytes():
    # Stay safely below physical VMEM (64 MiB/TC on v7x, 128 MiB on v5e/v6e).
    try:
        return int(pltpu.get_tpu_info().vmem_capacity_bytes) * 3 // 4
    except Exception:
        return 48 * 1024 * 1024          # v7x-safe fallback


def _up_kernel(x_ref, w_ref, mask_ref, o_ref, *,
               Wp, Lout, inv_count, negative_slope, final):
    # x_ref:    (1, Cin_p, Lx)       bf16  1-pixel-padded image, row-major flattened
    # w_ref:    (4, TC, 4*Cin_p)     bf16  per-phase, tap-concatenated weights
    # mask_ref: (1, Lout)            f32   1.0 on valid extended-grid positions
    # o_ref:    (1, 4, TC, Lout)     bf16  per-phase outputs (raw acc, then normalized)
    mask = mask_ref[...]                                    # (1, Lout)

    # 9 distinct shifted views (dy, dx in 0..2) of the flattened padded image,
    # hoisted out of the phase loop and sliced directly off the input ref.
    xs = [[x_ref[0, :, dy * Wp + dx: dy * Wp + dx + Lout] for dx in range(3)]
          for dy in range(3)]

    s_tot = None                                            # per-channel sum
    ss_tot = None                                           # per-channel sum of squares
    for p in range(4):                                      # output parity phase (ry, rx)
        ry, rx = divmod(p, 2)
        # Fuse the 2x2 taps of this phase into one MXU contraction: K = 4*Cin_p.
        rhs = jnp.concatenate(
            [xs[ry][rx], xs[ry][rx + 1], xs[ry + 1][rx], xs[ry + 1][rx + 1]],
            axis=0)                                         # (4*Cin_p, Lout) bf16
        acc = jnp.dot(w_ref[p], rhs,
                      preferred_element_type=jnp.float32)   # (TC, Lout) f32
        # Fused masked statistics for InstanceNorm (sum & sum-of-squares).
        masked = acc * mask
        s_p = jnp.sum(masked, axis=1, keepdims=True)        # (TC, 1)
        ss_p = jnp.sum(masked * acc, axis=1, keepdims=True)  # = sum(acc^2 * mask)
        s_tot = s_p if s_tot is None else s_tot + s_p
        ss_tot = ss_p if ss_tot is None else ss_tot + ss_p
        # Park the raw accumulator in the output block instead of a live f32 copy.
        o_ref[0, p] = acc.astype(o_ref.dtype)

    # InstanceNorm2d (affine=False, eps=1e-5, biased var) over the FULL spatial
    # extent = all 4 phases together.  Note: the ConvTranspose2d bias is exactly
    # cancelled by the mean subtraction, so it was never added.
    mean = s_tot * inv_count                                # (TC, 1)
    var = ss_tot * inv_count - mean * mean
    inv_std = lax.rsqrt(var + 1e-5)

    for p in range(4):
        y = (o_ref[0, p].astype(jnp.float32) - mean) * inv_std
        if final:
            y = jnp.tanh(y)
        else:
            y = jnp.where(y > 0, y, negative_slope * y)     # LeakyReLU(0.2)
        o_ref[0, p] = y.astype(o_ref.dtype)


@functools.partial(jax.jit, static_argnames=("concat", "final"))
def up_forward(x1, x2, weight, bias, *, concat=True, final=False):
    """Forward of `Up`. x1, x2: NCHW f32. weight: (in_ch, out_ch, 4, 4) PyTorch
    ConvTranspose2d layout; bias: (out_ch,) — unused (cancelled by InstanceNorm).
    Returns NCHW f32."""
    del bias  # per-channel bias before InstanceNorm(affine=False) is a no-op

    if concat:
        diffY = x2.shape[2] - x1.shape[2]
        diffX = x2.shape[3] - x1.shape[3]
        x1 = jnp.pad(
            x1,
            ((0, 0), (0, 0),
             (diffY // 2, diffY - diffY // 2),
             (diffX // 2, diffX - diffX // 2)))
        x = jnp.concatenate([x2, x1], axis=1)
    else:
        x = x1

    N, Cin, H, W = x.shape
    Cout = weight.shape[1]
    OH, OW = 2 * H, 2 * W               # k=4, s=2, p=1, output_padding=0
    Hp, Wp = H + 2, W + 2

    # bf16-tile-friendly channel padding (sublane tile = 16 for bf16).
    Cin_p = _round_up(Cin, 16)
    TC_MAX = 128                        # Cout tile (bounds per-step VMEM)
    Cout_p = _round_up(Cout, 16)
    if Cout_p > TC_MAX:
        Cout_p = _round_up(Cout, TC_MAX)
        TC = TC_MAX
    else:
        TC = Cout_p
    n_ct = Cout_p // TC

    Lout = _round_up(H * Wp, 128)             # extended per-phase grid, lane-dense
    Lx = _round_up(2 * Wp + 2 + Lout, 128)    # every shift + Lout stays in bounds

    # Compact input: 1-pixel halo pad, channel pad, row-major flatten. (No im2col.)
    xpad = jnp.pad(x, ((0, 0), (0, Cin_p - Cin), (1, 1), (1, 1)))
    xf = xpad.reshape(N, Cin_p, Hp * Wp)
    xf = jnp.pad(xf, ((0, 0), (0, 0), (0, Lx - Hp * Wp))).astype(jnp.bfloat16)

    # Polyphase weights, tap-fused: phase (ry, rx), tap (m, n) uses
    # W[:, :, 3-ry-2m, 3-rx-2n] (output pixel (2q+ry, 2r+rx) reads input
    # (q+ry+m-1, r+rx+n-1)); the 4 taps are concatenated along Cin so each phase
    # is a single (Cout_p, 4*Cin_p) matrix.
    wphases = []
    for ry in range(2):
        for rx in range(2):
            taps = []
            for m in range(2):
                for n in range(2):
                    wm = weight[:, :, 3 - ry - 2 * m, 3 - rx - 2 * n].T  # (Cout, Cin)
                    wm = jnp.pad(wm, ((0, Cout_p - Cout), (0, Cin_p - Cin)))
                    taps.append(wm)
            wphases.append(jnp.concatenate(taps, axis=1))                # (Cout_p, 4*Cin_p)
    wstk = jnp.stack(wphases, axis=0).astype(jnp.bfloat16)               # (4, Cout_p, 4*Cin_p)

    # Validity mask over the extended grid (q, r'), r' in [0, Wp): the 2 rightmost
    # columns per row are wrap-around junk; the tail beyond H*Wp is padding.
    mvalid = np.zeros((H, Wp), np.float32)
    mvalid[:, :W] = 1.0
    mask_np = np.zeros((1, Lout), np.float32)
    mask_np[0, :H * Wp] = mvalid.reshape(-1)
    mask = jnp.asarray(mask_np)

    Cin4 = 4 * Cin_p
    # Per-step VMEM budget (double-buffered pipeline blocks + in-kernel temps).
    vmem_est = (2 * Cin_p * Lx * 2            # input, bf16, double-buffered
                + 2 * 4 * TC * Cin4 * 2       # weights, bf16, double-buffered
                + 2 * Lout * 4                # mask
                + 2 * 4 * TC * Lout * 2       # output, bf16, double-buffered
                + 9 * Cin_p * Lout * 2        # hoisted shifted slices
                + Cin4 * Lout * 2             # per-phase fused rhs
                + 2 * TC * Lout * 4)          # f32 accumulator + stats temps
    vmem_limit = min(max(int(vmem_est * 1.4), 32 * 1024 * 1024), _vmem_cap_bytes())

    kern = functools.partial(
        _up_kernel, Wp=Wp, Lout=Lout, inv_count=1.0 / (OH * OW),
        negative_slope=0.2, final=final)

    out = pl.pallas_call(
        kern,
        out_shape=jax.ShapeDtypeStruct((N, 4, Cout_p, Lout), jnp.bfloat16),
        grid=(N, n_ct),
        in_specs=[
            pl.BlockSpec((1, Cin_p, Lx), lambda n, c: (n, 0, 0)),
            pl.BlockSpec((4, TC, Cin4), lambda n, c: (0, c, 0)),
            pl.BlockSpec((1, Lout), lambda n, c: (0, 0)),
        ],
        out_specs=pl.BlockSpec((1, 4, TC, Lout), lambda n, c: (n, 0, c, 0)),
        compiler_params=pltpu.CompilerParams(
            dimension_semantics=("parallel", "parallel"),
            vmem_limit_bytes=vmem_limit),
    )(xf, wstk, mask)

    # Depth-to-space: out[n, 2*ry+rx, co, q*Wp+r] -> y[n, co, 2q+ry, 2r+rx].
    # Channels are already leading, so no NHWC->NCHW transpose is needed.
    y = out[:, :, :Cout, :H * Wp].reshape(N, 2, 2, Cout, H, Wp)[..., :W]
    y = jnp.transpose(y, (0, 3, 4, 1, 5, 2)).reshape(N, Cout, OH, OW)
    return y.astype(jnp.float32)


def up_reference(x1, x2, weight, bias, *, concat=True, final=False):
    """Pure-JAX reference via lax.conv_general_dilated (independent code path)."""
    if concat:
        diffY = x2.shape[2] - x1.shape[2]
        diffX = x2.shape[3] - x1.shape[3]
        x1 = jnp.pad(
            x1,
            ((0, 0), (0, 0),
             (diffY // 2, diffY - diffY // 2),
             (diffX // 2, diffX - diffX // 2)))
        x = jnp.concatenate([x2, x1], axis=1)
    else:
        x = x1
    # ConvTranspose2d(s=2, p=1, k=4) == conv(lhs_dilation=2, pad=2, flipped kernel)
    w_flip = jnp.transpose(weight[:, :, ::-1, ::-1], (1, 0, 2, 3))   # (Cout,Cin,4,4)
    y = lax.conv_general_dilated(
        x, w_flip, window_strides=(1, 1), padding=[(2, 2), (2, 2)],
        lhs_dilation=(2, 2), rhs_dilation=(1, 1),
        dimension_numbers=("NCHW", "OIHW", "NCHW"))
    y = y + bias.reshape(1, -1, 1, 1)
    mean = y.mean(axis=(2, 3), keepdims=True)
    var = ((y - mean) ** 2).mean(axis=(2, 3), keepdims=True)
    y = (y - mean) / jnp.sqrt(var + 1e-5)
    return jnp.tanh(y) if final else jnp.where(y > 0, y, 0.2 * y)


if __name__ == "__main__":
    key = jax.random.PRNGKey(0)
    k1, k2, kw, kb = jax.random.split(key, 4)

    # Small shapes: concat=True => in_ch = C(x2) + C(x1) = 4, out_ch = 4.
    x1 = jax.random.normal(k1, (2, 2, 8, 8), jnp.float32)
    x2 = jax.random.normal(k2, (2, 2, 8, 8), jnp.float32)

    in_ch, out_ch = 4, 4
    weight = 0.1 * jax.random.normal(kw, (in_ch, out_ch, 4, 4), jnp.float32)
    bias = 0.1 * jax.random.normal(kb, (out_ch,), jnp.float32)

    for final in (False, True):
        out = jax.block_until_ready(
            up_forward(x1, x2, weight, bias, concat=True, final=final))
        ref = jax.block_until_ready(
            up_reference(x1, x2, weight, bias, concat=True, final=final))
        assert out.shape == (2, out_ch, 16, 16), out.shape
        # bf16 MXU operands + bf16 output path (f32 stats) => loose tolerance.
        np.testing.assert_allclose(np.asarray(out), np.asarray(ref),
                                   rtol=2e-2, atol=2.5e-2)
    print("KERNEL_OK")
</pallas_src>

<mosaic_0001>
module attributes {stable_mosaic.version = 11 : i64} {
  func.func @_up_kernel(%arg0: i32, %arg1: i32, %arg2: memref<1x16x256xbf16, #tpu.memory_space<vmem>>, %arg3: memref<4x16x64xbf16, #tpu.memory_space<vmem>>, %arg4: memref<1x128xf32, #tpu.memory_space<vmem>>, %arg5: memref<1x4x16x128xbf16, #tpu.memory_space<vmem>>) attributes {dimension_semantics = [#tpu.dimension_semantics<parallel>, #tpu.dimension_semantics<parallel>], iteration_bounds = array<i64: 2, 1>, scalar_prefetch = 0 : i64, scratch_operands = 0 : i64, tpu.core_type = #tpu.core_type<tc>, window_params = [{transform_indices = @transform_0, window_bounds = array<i64: 1, 16, 256>}, {transform_indices = @transform_1, window_bounds = array<i64: 4, 16, 64>}, {pipeline_mode = #tpu.pipeline_mode<synchronous>, transform_indices = @transform_2, window_bounds = array<i64: 1, 128>}, {transform_indices = @transform_3, window_bounds = array<i64: 1, 4, 16, 128>}]} {
    %c0 = arith.constant 0 : index
    %c0_0 = arith.constant 0 : index
    %0 = vector.load %arg4[%c0, %c0_0] : memref<1x128xf32, #tpu.memory_space<vmem>>, vector<1x128xf32>
    %c0_1 = arith.constant 0 : index
    %c0_2 = arith.constant 0 : index
    %c0_3 = arith.constant 0 : index
    %1 = vector.load %arg2[%c0_1, %c0_2, %c0_3] : memref<1x16x256xbf16, #tpu.memory_space<vmem>>, vector<1x16x128xbf16>
    %2 = vector.shape_cast %1 : vector<1x16x128xbf16> to vector<16x128xbf16>
    %c0_4 = arith.constant 0 : index
    %c0_5 = arith.constant 0 : index
    %c1 = arith.constant 1 : index
    %3 = vector.load %arg2[%c0_4, %c0_5, %c1] : memref<1x16x256xbf16, #tpu.memory_space<vmem>>, vector<1x16x128xbf16>
    %4 = vector.shape_cast %3 : vector<1x16x128xbf16> to vector<16x128xbf16>
    %c0_6 = arith.constant 0 : index
    %c0_7 = arith.constant 0 : index
    %c2 = arith.constant 2 : index
    %5 = vector.load %arg2[%c0_6, %c0_7, %c2] : memref<1x16x256xbf16, #tpu.memory_space<vmem>>, vector<1x16x128xbf16>
    %6 = vector.shape_cast %5 : vector<1x16x128xbf16> to vector<16x128xbf16>
    %c0_8 = arith.constant 0 : index
    %c0_9 = arith.constant 0 : index
    %c10 = arith.constant 10 : index
    %7 = vector.load %arg2[%c0_8, %c0_9, %c10] : memref<1x16x256xbf16, #tpu.memory_space<vmem>>, vector<1x16x128xbf16>
    %8 = vector.shape_cast %7 : vector<1x16x128xbf16> to vector<16x128xbf16>
    %c0_10 = arith.constant 0 : index
    %c0_11 = arith.constant 0 : index
    %c11 = arith.constant 11 : index
    %9 = vector.load %arg2[%c0_10, %c0_11, %c11] : memref<1x16x256xbf16, #tpu.memory_space<vmem>>, vector<1x16x128xbf16>
    %10 = vector.shape_cast %9 : vector<1x16x128xbf16> to vector<16x128xbf16>
    %c0_12 = arith.constant 0 : index
    %c0_13 = arith.constant 0 : index
    %c12 = arith.constant 12 : index
    %11 = vector.load %arg2[%c0_12, %c0_13, %c12] : memref<1x16x256xbf16, #tpu.memory_space<vmem>>, vector<1x16x128xbf16>
    %12 = vector.shape_cast %11 : vector<1x16x128xbf16> to vector<16x128xbf16>
    %c0_14 = arith.constant 0 : index
    %c0_15 = arith.constant 0 : index
    %c20 = arith.constant 20 : index
    %13 = vector.load %arg2[%c0_14, %c0_15, %c20] : memref<1x16x256xbf16, #tpu.memory_space<vmem>>, vector<1x16x128xbf16>
    %14 = vector.shape_cast %13 : vector<1x16x128xbf16> to vector<16x128xbf16>
    %c0_16 = arith.constant 0 : index
    %c0_17 = arith.constant 0 : index
    %c21 = arith.constant 21 : index
    %15 = vector.load %arg2[%c0_16, %c0_17, %c21] : memref<1x16x256xbf16, #tpu.memory_space<vmem>>, vector<1x16x128xbf16>
    %16 = vector.shape_cast %15 : vector<1x16x128xbf16> to vector<16x128xbf16>
    %c0_18 = arith.constant 0 : index
    %c0_19 = arith.constant 0 : index
    %c22 = arith.constant 22 : index
    %17 = vector.load %arg2[%c0_18, %c0_19, %c22] : memref<1x16x256xbf16, #tpu.memory_space<vmem>>, vector<1x16x128xbf16>
    %18 = vector.shape_cast %17 : vector<1x16x128xbf16> to vector<16x128xbf16>
    %19 = tpu.concatenate %2, %4, %8, %10 in 0 : vector<16x128xbf16>, vector<16x128xbf16>, vector<16x128xbf16>, vector<16x128xbf16> -> vector<64x128xbf16>
    %c0_20 = arith.constant 0 : index
    %c0_21 = arith.constant 0 : index
    %c0_22 = arith.constant 0 : index
    %20 = vector.load %arg3[%c0_20, %c0_21, %c0_22] : memref<4x16x64xbf16, #tpu.memory_space<vmem>>, vector<1x16x64xbf16>
    %21 = vector.shape_cast %20 : vector<1x16x64xbf16> to vector<16x64xbf16>
    %cst = arith.constant dense<0.000000e+00> : vector<16x128xf32>
    %22 = tpu.matmul %21, %19, %cst {dimension_numbers = #tpu.dot_dimension_numbers<[1], [0], [0], [1], [0, 0, 1, 1], [], []>} : vector<16x64xbf16>, vector<64x128xbf16>, vector<16x128xf32> -> vector<16x128xf32>
    %23 = vector.broadcast %0 : vector<1x128xf32> to vector<16x128xf32>
    %24 = arith.mulf %22, %23 : vector<16x128xf32>
    %cst_23 = arith.constant dense<0.000000e+00> : vector<16xf32>
    %25 = vector.multi_reduction <add>, %24, %cst_23 [1] : vector<16x128xf32> to vector<16xf32>
    %26 = vector.shape_cast %25 : vector<16xf32> to vector<16x1xf32>
    %27 = arith.mulf %24, %22 : vector<16x128xf32>
    %cst_24 = arith.constant dense<0.000000e+00> : vector<16xf32>
    %28 = vector.multi_reduction <add>, %27, %cst_24 [1] : vector<16x128xf32> to vector<16xf32>
    %29 = vector.shape_cast %28 : vector<16xf32> to vector<16x1xf32>
    %30 = arith.truncf %22 : vector<16x128xf32> to vector<16x128xbf16>
    %c0_25 = arith.constant 0 : index
    %c0_26 = arith.constant 0 : index
    %c0_27 = arith.constant 0 : index
    %c0_28 = arith.constant 0 : index
    %31 = vector.load %arg5[%c0_25, %c0_26, %c0_27, %c0_28] : memref<1x4x16x128xbf16, #tpu.memory_space<vmem>>, vector<1x1x16x128xbf16>
    %32 = vector.shape_cast %31 : vector<1x1x16x128xbf16> to vector<16x128xbf16>
    %33 = vector.shape_cast %30 : vector<16x128xbf16> to vector<1x1x16x128xbf16>
    tpu.vector_store %arg5[%c0_25, %c0_26, %c0_27, %c0_28], %33 {strides = array<i32>} : memref<1x4x16x128xbf16, #tpu.memory_space<vmem>>, vector<1x1x16x128xbf16>,
    %34 = tpu.concatenate %4, %6, %10, %12 in 0 : vector<16x128xbf16>, vector<16x128xbf16>, vector<16x128xbf16>, vector<16x128xbf16> -> vector<64x128xbf16>
    %c1_29 = arith.constant 1 : index
    %c0_30 = arith.constant 0 : index
    %c0_31 = arith.constant 0 : index
    %35 = vector.load %arg3[%c1_29, %c0_30, %c0_31] : memref<4x16x64xbf16, #tpu.memory_space<vmem>>, vector<1x16x64xbf16>
    %36 = vector.shape_cast %35 : vector<1x16x64xbf16> to vector<16x64xbf16>
    %cst_32 = arith.constant dense<0.000000e+00> : vector<16x128xf32>
    %37 = tpu.matmul %36, %34, %cst_32 {dimension_numbers = #tpu.dot_dimension_numbers<[1], [0], [0], [1], [0, 0, 1, 1], [], []>} : vector<16x64xbf16>, vector<64x128xbf16>, vector<16x128xf32> -> vector<16x128xf32>
    %38 = vector.broadcast %0 : vector<1x128xf32> to vector<16x128xf32>
    %39 = arith.mulf %37, %38 : vector<16x128xf32>
    %cst_33 = arith.constant dense<0.000000e+00> : vector<16xf32>
    %40 = vector.multi_reduction <add>, %39, %cst_33 [1] : vector<16x128xf32> to vector<16xf32>
    %41 = vector.shape_cast %40 : vector<16xf32> to vector<16x1xf32>
    %42 = arith.mulf %39, %37 : vector<16x128xf32>
    %cst_34 = arith.constant dense<0.000000e+00> : vector<16xf32>
    %43 = vector.multi_reduction <add>, %42, %cst_34 [1] : vector<16x128xf32> to vector<16xf32>
    %44 = vector.shape_cast %43 : vector<16xf32> to vector<16x1xf32>
    %45 = arith.addf %26, %41 : vector<16x1xf32>
    %46 = arith.addf %29, %44 : vector<16x1xf32>
    %47 = arith.truncf %37 : vector<16x128xf32> to vector<16x128xbf16>
    %c0_35 = arith.constant 0 : index
    %c1_36 = arith.constant 1 : index
    %c0_37 = arith.constant 0 : index
    %c0_38 = arith.constant 0 : index
    %48 = vector.load %arg5[%c0_35, %c1_36, %c0_37, %c0_38] : memref<1x4x16x128xbf16, #tpu.memory_space<vmem>>, vector<1x1x16x128xbf16>
    %49 = vector.shape_cast %48 : vector<1x1x16x128xbf16> to vector<16x128xbf16>
    %50 = vector.shape_cast %47 : vector<16x128xbf16> to vector<1x1x16x128xbf16>
    tpu.vector_store %arg5[%c0_35, %c1_36, %c0_37, %c0_38], %50 {strides = array<i32>} : memref<1x4x16x128xbf16, #tpu.memory_space<vmem>>, vector<1x1x16x128xbf16>,
    %51 = tpu.concatenate %8, %10, %14, %16 in 0 : vector<16x128xbf16>, vector<16x128xbf16>, vector<16x128xbf16>, vector<16x128xbf16> -> vector<64x128xbf16>
    %c2_39 = arith.constant 2 : index
    %c0_40 = arith.constant 0 : index
    %c0_41 = arith.constant 0 : index
    %52 = vector.load %arg3[%c2_39, %c0_40, %c0_41] : memref<4x16x64xbf16, #tpu.memory_space<vmem>>, vector<1x16x64xbf16>
    %53 = vector.shape_cast %52 : vector<1x16x64xbf16> to vector<16x64xbf16>
    %cst_42 = arith.constant dense<0.000000e+00> : vector<16x128xf32>
    %54 = tpu.matmul %53, %51, %cst_42 {dimension_numbers = #tpu.dot_dimension_numbers<[1], [0], [0], [1], [0, 0, 1, 1], [], []>} : vector<16x64xbf16>, vector<64x128xbf16>, vector<16x128xf32> -> vector<16x128xf32>
    %55 = vector.broadcast %0 : vector<1x128xf32> to vector<16x128xf32>
    %56 = arith.mulf %54, %55 : vector<16x128xf32>
    %cst_43 = arith.constant dense<0.000000e+00> : vector<16xf32>
    %57 = vector.multi_reduction <add>, %56, %cst_43 [1] : vector<16x128xf32> to vector<16xf32>
    %58 = vector.shape_cast %57 : vector<16xf32> to vector<16x1xf32>
    %59 = arith.mulf %56, %54 : vector<16x128xf32>
    %cst_44 = arith.constant dense<0.000000e+00> : vector<16xf32>
    %60 = vector.multi_reduction <add>, %59, %cst_44 [1] : vector<16x128xf32> to vector<16xf32>
    %61 = vector.shape_cast %60 : vector<16xf32> to vector<16x1xf32>
    %62 = arith.addf %45, %58 : vector<16x1xf32>
    %63 = arith.addf %46, %61 : vector<16x1xf32>
    %64 = arith.truncf %54 : vector<16x128xf32> to vector<16x128xbf16>
    %c0_45 = arith.constant 0 : index
    %c2_46 = arith.constant 2 : index
    %c0_47 = arith.constant 0 : index
    %c0_48 = arith.constant 0 : index
    %65 = vector.load %arg5[%c0_45, %c2_46, %c0_47, %c0_48] : memref<1x4x16x128xbf16, #tpu.memory_space<vmem>>, vector<1x1x16x128xbf16>
    %66 = vector.shape_cast %65 : vector<1x1x16x128xbf16> to vector<16x128xbf16>
    %67 = vector.shape_cast %64 : vector<16x128xbf16> to vector<1x1x16x128xbf16>
    tpu.vector_store %arg5[%c0_45, %c2_46, %c0_47, %c0_48], %67 {strides = array<i32>} : memref<1x4x16x128xbf16, #tpu.memory_space<vmem>>, vector<1x1x16x128xbf16>,
    %68 = tpu.concatenate %10, %12, %16, %18 in 0 : vector<16x128xbf16>, vector<16x128xbf16>, vector<16x128xbf16>, vector<16x128xbf16> -> vector<64x128xbf16>
    %c3 = arith.constant 3 : index
    %c0_49 = arith.constant 0 : index
    %c0_50 = arith.constant 0 : index
    %69 = vector.load %arg3[%c3, %c0_49, %c0_50] : memref<4x16x64xbf16, #tpu.memory_space<vmem>>, vector<1x16x64xbf16>
    %70 = vector.shape_cast %69 : vector<1x16x64xbf16> to vector<16x64xbf16>
    %cst_51 = arith.constant dense<0.000000e+00> : vector<16x128xf32>
    %71 = tpu.matmul %70, %68, %cst_51 {dimension_numbers = #tpu.dot_dimension_numbers<[1], [0], [0], [1], [0, 0, 1, 1], [], []>} : vector<16x64xbf16>, vector<64x128xbf16>, vector<16x128xf32> -> vector<16x128xf32>
    %72 = vector.broadcast %0 : vector<1x128xf32> to vector<16x128xf32>
    %73 = arith.mulf %71, %72 : vector<16x128xf32>
    %cst_52 = arith.constant dense<0.000000e+00> : vector<16xf32>
    %74 = vector.multi_reduction <add>, %73, %cst_52 [1] : vector<16x128xf32> to vector<16xf32>
    %75 = vector.shape_cast %74 : vector<16xf32> to vector<16x1xf32>
    %76 = arith.mulf %73, %71 : vector<16x128xf32>
    %cst_53 = arith.constant dense<0.000000e+00> : vector<16xf32>
    %77 = vector.multi_reduction <add>, %76, %cst_53 [1] : vector<16x128xf32> to vector<16xf32>
    %78 = vector.shape_cast %77 : vector<16xf32> to vector<16x1xf32>
    %79 = arith.addf %62, %75 : vector<16x1xf32>
    %80 = arith.addf %63, %78 : vector<16x1xf32>
    %81 = arith.truncf %71 : vector<16x128xf32> to vector<16x128xbf16>
    %c0_54 = arith.constant 0 : index
    %c3_55 = arith.constant 3 : index
    %c0_56 = arith.constant 0 : index
    %c0_57 = arith.constant 0 : index
    %82 = vector.load %arg5[%c0_54, %c3_55, %c0_56, %c0_57] : memref<1x4x16x128xbf16, #tpu.memory_space<vmem>>, vector<1x1x16x128xbf16>
    %83 = vector.shape_cast %82 : vector<1x1x16x128xbf16> to vector<16x128xbf16>
    %84 = vector.shape_cast %81 : vector<16x128xbf16> to vector<1x1x16x128xbf16>
    tpu.vector_store %arg5[%c0_54, %c3_55, %c0_56, %c0_57], %84 {strides = array<i32>} : memref<1x4x16x128xbf16, #tpu.memory_space<vmem>>, vector<1x1x16x128xbf16>,
    %cst_58 = arith.constant 3.906250e-03 : f32
    %85 = vector.broadcast %cst_58 : f32 to vector<16x1xf32>
    %86 = arith.mulf %79, %85 : vector<16x1xf32>
    %cst_59 = arith.constant 3.906250e-03 : f32
    %87 = vector.broadcast %cst_59 : f32 to vector<16x1xf32>
    %88 = arith.mulf %80, %87 : vector<16x1xf32>
    %89 = arith.mulf %86, %86 : vector<16x1xf32>
    %90 = arith.subf %88, %89 : vector<16x1xf32>
    %cst_60 = arith.constant 9.99999974E-6 : f32
    %91 = vector.broadcast %cst_60 : f32 to vector<16x1xf32>
    %92 = arith.addf %90, %91 : vector<16x1xf32>
    %93 = math.rsqrt %92 : vector<16x1xf32>
    %c0_61 = arith.constant 0 : index
    %c0_62 = arith.constant 0 : index
    %c0_63 = arith.constant 0 : index
    %c0_64 = arith.constant 0 : index
    %94 = vector.load %arg5[%c0_61, %c0_62, %c0_63, %c0_64] : memref<1x4x16x128xbf16, #tpu.memory_space<vmem>>, vector<1x1x16x128xbf16>
    %95 = vector.shape_cast %94 : vector<1x1x16x128xbf16> to vector<16x128xbf16>
    %96 = arith.extf %95 : vector<16x128xbf16> to vector<16x128xf32>
    %97 = vector.broadcast %86 : vector<16x1xf32> to vector<16x128xf32>
    %98 = arith.subf %96, %97 : vector<16x128xf32>
    %99 = vector.broadcast %93 : vector<16x1xf32> to vector<16x128xf32>
    %100 = arith.mulf %98, %99 : vector<16x128xf32>
    %cst_65 = arith.constant 0.000000e+00 : f32
    %101 = vector.broadcast %cst_65 : f32 to vector<16x128xf32>
    %102 = arith.cmpf ogt, %100, %101 : vector<16x128xf32>
    %cst_66 = arith.constant 2.000000e-01 : f32
    %103 = vector.broadcast %cst_66 : f32 to vector<16x128xf32>
    %104 = arith.mulf %103, %100 : vector<16x128xf32>
    %105 = arith.select %102, %100, %104 : vector<16x128xi1>, vector<16x128xf32>
    %106 = arith.truncf %105 : vector<16x128xf32> to vector<16x128xbf16>
    %c0_67 = arith.constant 0 : index
    %c0_68 = arith.constant 0 : index
    %c0_69 = arith.constant 0 : index
    %c0_70 = arith.constant 0 : index
    %107 = vector.load %arg5[%c0_67, %c0_68, %c0_69, %c0_70] : memref<1x4x16x128xbf16, #tpu.memory_space<vmem>>, vector<1x1x16x128xbf16>
    %108 = vector.shape_cast %107 : vector<1x1x16x128xbf16> to vector<16x128xbf16>
    %109 = vector.shape_cast %106 : vector<16x128xbf16> to vector<1x1x16x128xbf16>
    tpu.vector_store %arg5[%c0_67, %c0_68, %c0_69, %c0_70], %109 {strides = array<i32>} : memref<1x4x16x128xbf16, #tpu.memory_space<vmem>>, vector<1x1x16x128xbf16>,
    %c0_71 = arith.constant 0 : index
    %c1_72 = arith.constant 1 : index
    %c0_73 = arith.constant 0 : index
    %c0_74 = arith.constant 0 : index
    %110 = vector.load %arg5[%c0_71, %c1_72, %c0_73, %c0_74] : memref<1x4x16x128xbf16, #tpu.memory_space<vmem>>, vector<1x1x16x128xbf16>
    %111 = vector.shape_cast %110 : vector<1x1x16x128xbf16> to vector<16x128xbf16>
    %112 = arith.extf %111 : vector<16x128xbf16> to vector<16x128xf32>
    %113 = vector.broadcast %86 : vector<16x1xf32> to vector<16x128xf32>
    %114 = arith.subf %112, %113 : vector<16x128xf32>
    %115 = vector.broadcast %93 : vector<16x1xf32> to vector<16x128xf32>
    %116 = arith.mulf %114, %115 : vector<16x128xf32>
    %cst_75 = arith.constant 0.000000e+00 : f32
    %117 = vector.broadcast %cst_75 : f32 to vector<16x128xf32>
    %118 = arith.cmpf ogt, %116, %117 : vector<16x128xf32>
    %cst_76 = arith.constant 2.000000e-01 : f32
    %119 = vector.broadcast %cst_76 : f32 to vector<16x128xf32>
    %120 = arith.mulf %119, %116 : vector<16x128xf32>
    %121 = arith.select %118, %116, %120 : vector<16x128xi1>, vector<16x128xf32>
    %122 = arith.truncf %121 : vector<16x128xf32> to vector<16x128xbf16>
    %c0_77 = arith.constant 0 : index
    %c1_78 = arith.constant 1 : index
    %c0_79 = arith.constant 0 : index
    %c0_80 = arith.constant 0 : index
    %123 = vector.load %arg5[%c0_77, %c1_78, %c0_79, %c0_80] : memref<1x4x16x128xbf16, #tpu.memory_space<vmem>>, vector<1x1x16x128xbf16>
    %124 = vector.shape_cast %123 : vector<1x1x16x128xbf16> to vector<16x128xbf16>
    %125 = vector.shape_cast %122 : vector<16x128xbf16> to vector<1x1x16x128xbf16>
    tpu.vector_store %arg5[%c0_77, %c1_78, %c0_79, %c0_80], %125 {strides = array<i32>} : memref<1x4x16x128xbf16, #tpu.memory_space<vmem>>, vector<1x1x16x128xbf16>,
    %c0_81 = arith.constant 0 : index
    %c2_82 = arith.constant 2 : index
    %c0_83 = arith.constant 0 : index
    %c0_84 = arith.constant 0 : index
    %126 = vector.load %arg5[%c0_81, %c2_82, %c0_83, %c0_84] : memref<1x4x16x128xbf16, #tpu.memory_space<vmem>>, vector<1x1x16x128xbf16>
    %127 = vector.shape_cast %126 : vector<1x1x16x128xbf16> to vector<16x128xbf16>
    %128 = arith.extf %127 : vector<16x128xbf16> to vector<16x128xf32>
    %129 = vector.broadcast %86 : vector<16x1xf32> to vector<16x128xf32>
    %130 = arith.subf %128, %129 : vector<16x128xf32>
    %131 = vector.broadcast %93 : vector<16x1xf32> to vector<16x128xf32>
    %132 = arith.mulf %130, %131 : vector<16x128xf32>
    %cst_85 = arith.constant 0.000000e+00 : f32
    %133 = vector.broadcast %cst_85 : f32 to vector<16x128xf32>
    %134 = arith.cmpf ogt, %132, %133 : vector<16x128xf32>
    %cst_86 = arith.constant 2.000000e-01 : f32
    %135 = vector.broadcast %cst_86 : f32 to vector<16x128xf32>
    %136 = arith.mulf %135, %132 : vector<16x128xf32>
    %137 = arith.select %134, %132, %136 : vector<16x128xi1>, vector<16x128xf32>
    %138 = arith.truncf %137 : vector<16x128xf32> to vector<16x128xbf16>
    %c0_87 = arith.constant 0 : index
    %c2_88 = arith.constant 2 : index
    %c0_89 = arith.constant 0 : index
    %c0_90 = arith.constant 0 : index
    %139 = vector.load %arg5[%c0_87, %c2_88, %c0_89, %c0_90] : memref<1x4x16x128xbf16, #tpu.memory_space<vmem>>, vector<1x1x16x128xbf16>
    %140 = vector.shape_cast %139 : vector<1x1x16x128xbf16> to vector<16x128xbf16>
    %141 = vector.shape_cast %138 : vector<16x128xbf16> to vector<1x1x16x128xbf16>
    tpu.vector_store %arg5[%c0_87, %c2_88, %c0_89, %c0_90], %141 {strides = array<i32>} : memref<1x4x16x128xbf16, #tpu.memory_space<vmem>>, vector<1x1x16x128xbf16>,
    %c0_91 = arith.constant 0 : index
    %c3_92 = arith.constant 3 : index
    %c0_93 = arith.constant 0 : index
    %c0_94 = arith.constant 0 : index
    %142 = vector.load %arg5[%c0_91, %c3_92, %c0_93, %c0_94] : memref<1x4x16x128xbf16, #tpu.memory_space<vmem>>, vector<1x1x16x128xbf16>
    %143 = vector.shape_cast %142 : vector<1x1x16x128xbf16> to vector<16x128xbf16>
    %144 = arith.extf %143 : vector<16x128xbf16> to vector<16x128xf32>
    %145 = vector.broadcast %86 : vector<16x1xf32> to vector<16x128xf32>
    %146 = arith.subf %144, %145 : vector<16x128xf32>
    %147 = vector.broadcast %93 : vector<16x1xf32> to vector<16x128xf32>
    %148 = arith.mulf %146, %147 : vector<16x128xf32>
    %cst_95 = arith.constant 0.000000e+00 : f32
    %149 = vector.broadcast %cst_95 : f32 to vector<16x128xf32>
    %150 = arith.cmpf ogt, %148, %149 : vector<16x128xf32>
    %cst_96 = arith.constant 2.000000e-01 : f32
    %151 = vector.broadcast %cst_96 : f32 to vector<16x128xf32>
    %152 = arith.mulf %151, %148 : vector<16x128xf32>
    %153 = arith.select %150, %148, %152 : vector<16x128xi1>, vector<16x128xf32>
    %154 = arith.truncf %153 : vector<16x128xf32> to vector<16x128xbf16>
    %c0_97 = arith.constant 0 : index
    %c3_98 = arith.constant 3 : index
    %c0_99 = arith.constant 0 : index
    %c0_100 = arith.constant 0 : index
    %155 = vector.load %arg5[%c0_97, %c3_98, %c0_99, %c0_100] : memref<1x4x16x128xbf16, #tpu.memory_space<vmem>>, vector<1x1x16x128xbf16>
    %156 = vector.shape_cast %155 : vector<1x1x16x128xbf16> to vector<16x128xbf16>
    %157 = vector.shape_cast %154 : vector<16x128xbf16> to vector<1x1x16x128xbf16>
    tpu.vector_store %arg5[%c0_97, %c3_98, %c0_99, %c0_100], %157 {strides = array<i32>} : memref<1x4x16x128xbf16, #tpu.memory_space<vmem>>, vector<1x1x16x128xbf16>,
    return
  }
  func.func @transform_0(%arg0: i32, %arg1: i32) -> (i32, i32, i32) {
    %c0_i32 = arith.constant 0 : i32
    %c0_i32_0 = arith.constant 0 : i32
    %c0_i32_1 = arith.constant 0 : i32
    return %arg0, %c0_i32, %c0_i32_0 : i32, i32, i32
  }
  func.func @transform_1(%arg0: i32, %arg1: i32) -> (i32, i32, i32) {
    %c0_i32 = arith.constant 0 : i32
    %c0_i32_0 = arith.constant 0 : i32
    %c0_i32_1 = arith.constant 0 : i32
    return %c0_i32, %arg1, %c0_i32_0 : i32, i32, i32
  }
  func.func @transform_2(%arg0: i32, %arg1: i32) -> (i32, i32) {
    %c0_i32 = arith.constant 0 : i32
    %c0_i32_0 = arith.constant 0 : i32
    %c0_i32_1 = arith.constant 0 : i32
    return %c0_i32, %c0_i32_0 : i32, i32
  }
  func.func @transform_3(%arg0: i32, %arg1: i32) -> (i32, i32, i32, i32) {
    %c0_i32 = arith.constant 0 : i32
    %c0_i32_0 = arith.constant 0 : i32
    %c0_i32_1 = arith.constant 0 : i32
    return %arg0, %c0_i32, %arg1, %c0_i32_0 : i32, i32, i32, i32
  }
}

</mosaic_0001>

<bundles_post_ra>
// kernel: up_forward.1
= control target key start
LH: loop header
LB: loop body
LE: loop exit
PB: predicated region body
PF: predicated region fallthrough
CT: control target
= control target key end

     0   :  { %s1137_s12 = smov 0   ;;  %s1139_s13 = smov 0   ;;  %s1272_s0 = inlined_call_operand.vmem [shape: bf16[2,16,256], index: 0, kind: input, shape index: {}]   ;;  %s1273_s1 = inlined_call_operand.vmem [shape: bf16[4,16,64], index: 1, kind: input, shape index: {}]   ;;  %s1274_s2 = inlined_call_operand.vmem [shape: f32[1,128], index: 2, kind: input, shape index: {}]   ;;  %s1275_s3 = inlined_call_operand.vmem [shape: bf16[2,4,16,128], index: 3, kind: output, shape index: {}]  }
   0x1   :  { %s1141_s14 = smov 0  }
   0x2 LB: > { %s25_s15 = sadd.s32 1, %s1106_s13  ;;  %p837_p0 = scmp.ge.s32.totalorder %s1110_s14, 1  ;;  %s1110_s14 = sphi %s1141_s14, %s13_s14   ;;  %s1106_s13 = sphi %s1139_s13, %s1277_s13   ;;  %s1102_s12 = sphi %s1137_s12, %s1276_s12  }
   0x3   : > { %p27_p1 = scmp.ge.s32.totalorder %s25_s15, 2  ;;  %p162_p2 = scmp.lt.s32.totalorder %s1110_s14, 3 }
   0x5   : > { %s1279_s15 = smov (%p27_p1, %s25_s15), 0  ;;  %p163_p3 = pnand %p837_p0, %p162_p2 }
   0x6   : > { %p195_p4 = scmp.lt.s32.totalorder (!%p163_p3), %s1102_s12, 1  ;;  %v1112_v0 = vmov (!%p163_p3), 0.0   ;;  %s1113_s20 = smov (!%p163_p3), 118   ;;  %vm1115_vm0 = vmmov (!%p163_p3), 0   ;;  %vm240_vm1 = vcmask (!%p163_p3), 1039360   ;;  %vm247_vm2 = vcmask (!%p163_p3), 965632  }
   0x7   : > { %166 = sbr.rel (%p163_p3) target bundleno = 689 (0x2b1), region = 32  ;;  %999 = vmatprep.subr.bf16.mxu0 (!%p163_p3), %v1112_v0  ;;  %1011 = vmatprep.subr.bf16.mxu1 (!%p163_p3), %v1112_v0  ;;  %s1114_s21 = smov (!%p163_p3), 127   ;;  %vm254_vm3 = vcmask (!%p163_p3), 957440   ;;  %v1080_v13 = vld [vmem:[%s1273_s1] sm:$0xff] (!%p163_p3)   ;;  %vm264_vm4 = vcmask (!%p163_p3), 523264   ;;  %v1081_v23 = vld [vmem:[%s1273_s1 + $0x8] sm:$0xff] (!%p163_p3)  }
   0x8   : > { %1007 = vmatprep.mubr.msk.bf16.mxu0 (!%p163_p3), %vm1115_vm0, %v1112_v0  ;;  %1019 = vmatprep.mubr.msk.bf16.mxu1 (!%p163_p3), %vm1115_vm0, %v1112_v0  ;;  %s1116_s22 = smov (!%p163_p3), 117   ;;  %v1082_v39 = vld [vmem:[%s1273_s1 + $0x10] sm:$0xff] (!%p163_p3)   ;;  %v1083_v43 = vld [vmem:[%s1273_s1 + $0x18] sm:$0xff] (!%p163_p3)   ;;  %v847_v44 = vld [vmem:[%s1274_s2] ss:$0 sm:$0xff] (!%p163_p3) }
   0xe   : > { %s1281_s12 = smov (!%p195_p4, %s1102_s12), 1 }
   0xf   : > { %s896_s16 = sshll.u32 %s1281_s12, 4  ;;  %s897_s6 = sshll.u32 %s1281_s12, 5 }
  0x10   : > { %s199_s19 = scalar_lea.vmem %s1272_s0, %s896_s16  ;;  %s214_s9 = scalar_lea.vmem %s1275_s3, %s897_s6 }
  0x11   : > { %v1076_v1 = vld [vmem:[%s199_s19] ss:$8 sps:$4 sm:$0xff]   ;;  %v1078_v2 = vld [vmem:[%s199_s19 + $0x4] ss:$8 sps:$4 sm:$0xff]  }
  0x12   : > { %243 = vrot.lane.b32.xlu1 %v1076_v1, %s1113_s20  ;;  %236 = vrot.lane.b32.xlu0 %v1076_v1, %s1114_s21  ;;  %v1079_v3 = vld [vmem:[%s199_s19] ss:$8 sps:$4 sm:$0xff]  }
  0x13   : > { %1000 = vmatpush3.bf16.msra.mxu0 %v1079_v3 }
  0x14   : > { %1001 = vmatprep.subr.bf16.mxu0 %v1112_v0 }
  0x16   : > { %245 = vrot.lane.b32.xlu1 %v1078_v2, %s1113_s20  ;;  %238 = vrot.lane.b32.xlu0 %v1078_v2, %s1114_s21 }
  0x1a   : > { %252 = vrot.lane.b32.xlu1 %v1078_v2, %s1116_s22  ;;  %250 = vrot.lane.b32.xlu0 %v1076_v1, %s1116_s22 }
  0x84   : > { %v244_v4 = vpop.permute.xlu1 %243  ;;  %v237_v5 = vpop.permute.xlu0 %236 }
  0x88   : > { %v246_v6 = vpop.permute.xlu1 %245  ;;  %v239_v7 = vpop.permute.xlu0 %238 }
  0x89   : > { %347 = vrot.lane.b32.xlu1 %v239_v7, %s1114_s21  ;;  %v241_v8 = vsel %vm240_vm1, %v237_v5, %v239_v7  ;;  %v248_v11 = vsel %vm247_vm2, %v244_v4, %v246_v6 }
  0x8a   : > { %345 = vrot.lane.b32.xlu0 %v241_v8, %s1114_s21  ;;  %1002 = vmatpush3.bf16.msra.mxu0 %v241_v8 }
  0x8b   : > { %1012 = vmatpush3.bf16.msra.mxu1 %v241_v8  ;;  %1003 = vmatprep.subr.bf16.mxu0 %v1112_v0 }
  0x8c   : > { %v253_v9 = vpop.permute.xlu1 %252  ;;  %v251_v10 = vpop.permute.xlu0 %250  ;;  %1013 = vmatprep.subr.bf16.mxu1 %v1112_v0 }
  0x8d   : > { %351 = vrot.lane.b32.xlu1 %v246_v6, %s1114_s21  ;;  %v255_v12 = vsel %vm254_vm3, %v251_v10, %v253_v9 }
  0x8e   : > { %349 = vrot.lane.b32.xlu0 %v248_v11, %s1114_s21  ;;  %1004 = vmatpush3.bf16.msra.mxu0 %v248_v11 }
  0x8f   : > { %1005 = vmatprep.subr.bf16.mxu0 %v1112_v0 }
  0x91   : > { %355 = vrot.lane.b32.xlu1 %v253_v9, %s1114_s21 }
  0x92   : > { %353 = vrot.lane.b32.xlu0 %v255_v12, %s1114_s21  ;;  %1006 = vmatpush3.bf16.msra.mxu0 %v255_v12 }
  0x93   : > { %1023 = vmatprep.subr.bf16.mxu0 %v1112_v0 }
  0x95   : > { %444 = vrot.lane.b32.xlu1 %v239_v7, %s1113_s20  ;;  %1008 = vmatmul.mubr.msk.bf16.vlgmr.msra.gmra.mrb[0].mxu0 %vm264_vm4, %v1080_v13 }
  0x96   : > { %442 = vrot.lane.b32.xlu0 %v241_v8, %s1113_s20  ;;  %1024 = vmatpush3.bf16.msra.mxu0 %v248_v11 }
  0x97   : > { %1025 = vmatprep.subr.bf16.mxu0 %v1112_v0  ;;  %1031 = vmatprep.mubr.msk.bf16.mxu0 %vm1115_vm0, %v1112_v0 }
  0x99   : > { %541 = vrot.lane.b32.xlu1 %v239_v7, %s1116_s22 }
  0x9a   : > { %539 = vrot.lane.b32.xlu0 %v241_v8, %s1116_s22 }
  0x9d   : > { %448 = vrot.lane.b32.xlu1 %v246_v6, %s1113_s20 }
  0x9e   : > { %446 = vrot.lane.b32.xlu0 %v248_v11, %s1113_s20 }
  0xa1   : > { %545 = vrot.lane.b32.xlu1 %v246_v6, %s1116_s22 }
  0xa2   : > { %543 = vrot.lane.b32.xlu0 %v248_v11, %s1116_s22 }
  0xa5   : > { %452 = vrot.lane.b32.xlu1 %v253_v9, %s1113_s20 }
  0xa6   : > { %450 = vrot.lane.b32.xlu0 %v255_v12, %s1113_s20 }
  0xa9   : > { %549 = vrot.lane.b32.xlu1 %v253_v9, %s1116_s22 }
  0xaa   : > { %547 = vrot.lane.b32.xlu0 %v255_v12, %s1116_s22 }
  0xfb   : > { %v348_v14 = vpop.permute.xlu1 %347 }
  0xfc   : > { %v346_v15 = vpop.permute.xlu0 %345 }
  0xfd   : > { %v357_v16 = vsel %vm240_vm1, %v346_v15, %v348_v14 }
  0xfe   : > { %1014 = vmatpush3.bf16.msra.mxu1 %v357_v16 }
  0xff   : > { %v352_v17 = vpop.permute.xlu1 %351  ;;  %1015 = vmatprep.subr.bf16.mxu1 %v1112_v0 }
 0x100   : > { %v350_v18 = vpop.permute.xlu0 %349 }
 0x101   : > { %v358_v19 = vsel %vm240_vm1, %v350_v18, %v352_v17 }
 0x102   : > { %1016 = vmatpush3.bf16.msra.mxu1 %v358_v19 }
 0x103   : > { %v356_v20 = vpop.permute.xlu1 %355  ;;  %1017 = vmatprep.subr.bf16.mxu1 %v1112_v0 }
 0x104   : > { %v354_v21 = vpop.permute.xlu0 %353 }
 0x105   : > { %v359_v22 = vsel %vm240_vm1, %v354_v21, %v356_v20 }
 0x106   : > { %1018 = vmatpush3.bf16.msra.mxu1 %v359_v22 }
 0x107   : > { %v445_v24 = vpop.permute.xlu1 %444  ;;  %1035 = vmatprep.subr.bf16.mxu1 %v1112_v0 }
 0x108   : > { %v443_v25 = vpop.permute.xlu0 %442 }
 0x109   : > { %v454_v26 = vsel %vm247_vm2, %v443_v25, %v445_v24  ;;  %1020 = vmatmul.mubr.msk.bf16.vlgmr.msra.gmra.mrb[0].mxu1 %vm264_vm4, %v1081_v23 }
 0x10a   : > { %1026 = vmatpush3.bf16.msra.mxu0 %v454_v26  ;;  %1036 = vmatpush3.bf16.msra.mxu1 %v255_v12 }
 0x10b   : > { %v542_v27 = vpop.permute.xlu1 %541  ;;  %1037 = vmatprep.subr.bf16.mxu1 %v1112_v0  ;;  %1027 = vmatprep.subr.bf16.mxu0 %v1112_v0 }
 0x10c   : > { %v540_v28 = vpop.permute.xlu0 %539  ;;  %1043 = vmatprep.mubr.msk.bf16.mxu1 %vm1115_vm0, %v1112_v0 }
 0x10d   : > { %v551_v29 = vsel %vm254_vm3, %v540_v28, %v542_v27 }
 0x10e   : > { %1038 = vmatpush3.bf16.msra.mxu1 %v551_v29 }
 0x10f   : > { %v449_v30 = vpop.permute.xlu1 %448  ;;  %1039 = vmatprep.subr.bf16.mxu1 %v1112_v0 }
 0x110   : > { %v447_v31 = vpop.permute.xlu0 %446 }
 0x111   : > { %v455_v32 = vsel %vm247_vm2, %v447_v31, %v449_v30 }
 0x112   : > { %1028 = vmatpush3.bf16.msra.mxu0 %v455_v32 }
 0x113   : > { %v546_v33 = vpop.permute.xlu1 %545  ;;  %1029 = vmatprep.subr.bf16.mxu0 %v1112_v0 }
 0x114   : > { %v544_v34 = vpop.permute.xlu0 %543 }
 0x115   : > { %v552_v35 = vsel %vm254_vm3, %v544_v34, %v546_v33 }
 0x116   : > { %1040 = vmatpush3.bf16.msra.mxu1 %v552_v35 }
 0x117   : > { %v453_v36 = vpop.permute.xlu1 %452  ;;  %1041 = vmatprep.subr.bf16.mxu1 %v1112_v0 }
 0x118   : > { %v451_v37 = vpop.permute.xlu0 %450 }
 0x119   : > { %v456_v38 = vsel %vm247_vm2, %v451_v37, %v453_v36 }
 0x11a   : > { %1030 = vmatpush3.bf16.msra.mxu0 %v456_v38 }
 0x11b   : > { %v550_v40 = vpop.permute.xlu1 %549 }
 0x11c   : > { %v548_v41 = vpop.permute.xlu0 %547 }
 0x11d   : > { %v553_v42 = vsel %vm254_vm3, %v548_v41, %v550_v40  ;;  %1032 = vmatmul.mubr.msk.bf16.vlgmr.msra.gmra.mrb[4].mxu0 %vm264_vm4, %v1082_v39 }
 0x11e   : > { %1042 = vmatpush3.bf16.msra.mxu1 %v553_v42 }
 0x121   : > { %1044 = vmatmul.mubr.msk.bf16.vlgmr.msra.gmra.mrb[4].mxu1 %vm264_vm4, %v1083_v43 }
 0x168   : > { %v302_v45 = vpop.f32.mrb[0].mxu0 }
 0x169   : > { %v1009_v46 = vpop.f32.mrb[1].mxu0  ;;  %v315_v47 = vmul.f32 %v847_v44, %v302_v45 }
 0x16a   : > { %v305_v48 = vpop.f32.mrb[2].mxu0 }
 0x16b   : > { %v1240_v49 = vpack.c.bf16 %v305_v48, %v302_v45  ;;  %317 = vadd.xlane.f32.xlu0 %v315_v47  ;;  %v316_v50 = vmul.f32 %v847_v44, %v305_v48  ;;  %v1010_v51 = vpop.f32.mrb[3].mxu0  ;;  %v321_v53 = vmul.f32 %v315_v47, %v302_v45 }
 0x16d   : > { %v322_v52 = vmul.f32 %v316_v50, %v305_v48  ;;  %319 = vadd.xlane.f32.xlu1 %v316_v50 }
 0x16f   : > { %325 = vadd.xlane.f32.xlu0 %v322_v52 }
 0x171   : > { %323 = vadd.xlane.f32.xlu1 %v321_v53 }
 0x1dc   : > { %v400_v54 = vpop.f32.mrb[0].mxu1 }
 0x1dd   : > { %v1021_v55 = vpop.f32.mrb[1].mxu1  ;;  %v407_v56 = vmul.f32 %v847_v44, %v400_v54 }
 0x1de   : > { %v403_v57 = vpop.f32.mrb[2].mxu1 }
 0x1df   : > { %409 = vadd.xlane.f32.xlu0 %v407_v56  ;;  %v1242_v58 = vpack.c.bf16 %v403_v57, %v400_v54  ;;  %v408_v59 = vmul.f32 %v847_v44, %v403_v57  ;;  %v1022_v60 = vpop.f32.mrb[3].mxu1  ;;  %v413_v5 = vmul.f32 %v407_v56, %v400_v54  ;;  %v936_v56 = vunpack.c.l.bf16 %v1240_v49 }
 0x1e1   : > { %v414_v8 = vmul.f32 %v408_v59, %v403_v57  ;;  %v945_v57 = vunpack.c.l.bf16 %v1242_v58 }
 0x1e3   : > { %411 = vadd.xlane.f32.xlu0 %v408_v59 }
 0x1f0   : > { %v497_v61 = vpop.f32.mrb[4].mxu0 }
 0x1f1   : > { %v1033_v62 = vpop.f32.mrb[5].mxu0  ;;  %v504_v63 = vmul.f32 %v847_v44, %v497_v61 }
 0x1f2   : > { %v500_v0 = vpop.f32.mrb[6].mxu0  ;;  %v946_v62 = vunpack.c.h.bf16 %v1242_v58 }
 0x1f3   : > { %v1244_v1 = vpack.c.bf16 %v500_v0, %v497_v61  ;;  %506 = vadd.xlane.f32.xlu1 %v504_v63  ;;  %v1034_v2 = vpop.f32.mrb[7].mxu0  ;;  %v505_v3 = vmul.f32 %v847_v44, %v500_v0  ;;  %v510_v11 = vmul.f32 %v504_v63, %v497_v61  ;;  %v937_v61 = vunpack.c.h.bf16 %v1240_v49 }
 0x1f4   : > { %v594_v4 = vpop.f32.mrb[4].mxu1 }
 0x1f5   : > { %508 = vadd.xlane.f32.xlu0 %v505_v3  ;;  %v1045_v6 = vpop.f32.mrb[5].mxu1  ;;  %v511_v12 = vmul.f32 %v505_v3, %v500_v0  ;;  %v601_v13 = vmul.f32 %v847_v44, %v594_v4  ;;  %v954_v60 = vunpack.c.l.bf16 %v1244_v1  ;;  %v955_v63 = vunpack.c.h.bf16 %v1244_v1 }
 0x1f6   : > { %v597_v7 = vpop.f32.mrb[6].mxu1 }
 0x1f7   : > { %415 = vadd.xlane.f32.xlu1 %v413_v5  ;;  %v1246_v9 = vpack.c.bf16 %v597_v7, %v594_v4  ;;  %v1046_v10 = vpop.f32.mrb[7].mxu1  ;;  %v602_v14 = vmul.f32 %v847_v44, %v597_v7  ;;  %v607_v15 = vmul.f32 %v601_v13, %v594_v4 }
 0x1f8   : > { %v318_v17 = vpop.xlane.xlu0 %317 }
 0x1f9   : > { %417 = vadd.xlane.f32.xlu0 %v414_v8  ;;  %v608_v16 = vmul.f32 %v602_v14, %v597_v7  ;;  %v963_v59 = vunpack.c.l.bf16 %v1246_v9  ;;  %v964_v0 = vunpack.c.h.bf16 %v1246_v9 }
 0x1fa   : > { %v320_v19 = vpop.xlane.xlu1 %319 }
 0x1fb   : > { %512 = vadd.xlane.f32.xlu1 %v510_v11 }
 0x1fc   : > { %v326_v18 = vpop.xlane.xlu0 %325 }
 0x1fd   : > { %514 = vadd.xlane.f32.xlu0 %v511_v12 }
 0x1fe   : > { %v324_v21 = vpop.xlane.xlu1 %323 }
 0x1ff   : > { %603 = vadd.xlane.f32.xlu1 %v601_v13 }
 0x201   : > { %605 = vadd.xlane.f32.xlu0 %v602_v14 }
 0x203   : > { %609 = vadd.xlane.f32.xlu1 %v607_v15 }
 0x205   : > { %611 = vadd.xlane.f32.xlu0 %v608_v16 }
 0x26c   : > { %v410_v20 = vpop.xlane.xlu0 %409 }
 0x26d   : > { %v419_v28 = vadd.f32 %v410_v20, %v318_v17 }
 0x270   : > { %v412_v22 = vpop.xlane.xlu0 %411 }
 0x271   : > { %v420_v30 = vadd.f32 %v412_v22, %v320_v19 }
 0x280   : > { %v507_v23 = vpop.xlane.xlu1 %506 }
 0x281   : > { %v516_v31 = vadd.f32 %v507_v23, %v419_v28 }
 0x282   : > { %v509_v24 = vpop.xlane.xlu0 %508 }
 0x283   : > { %v517_v33 = vadd.f32 %v509_v24, %v420_v30 }
 0x284   : > { %v416_v25 = vpop.xlane.xlu1 %415 }
 0x285   : > { %v421_v35 = vadd.f32 %v416_v25, %v324_v21 }
 0x286   : > { %v418_v26 = vpop.xlane.xlu0 %417 }
 0x287   : > { %v422_v37 = vadd.f32 %v418_v26, %v326_v18 }
 0x288   : > { %v513_v27 = vpop.xlane.xlu1 %512 }
 0x289   : > { %v518_v39 = vadd.f32 %v513_v27, %v421_v35 }
 0x28a   : > { %v515_v29 = vpop.xlane.xlu0 %514 }
 0x28b   : > { %v519_v41 = vadd.f32 %v515_v29, %v422_v37 }
 0x28c   : > { %v604_v32 = vpop.xlane.xlu1 %603 }
 0x28d   : > { %v613_v34 = vadd.f32 %v604_v32, %v516_v31 }
 0x28e   : > { %v606_v36 = vpop.xlane.xlu0 %605 }
 0x28f   : > { %v614_v38 = vadd.f32 %v606_v36, %v517_v33  ;;  %v628_v42 = vmul.f32 0.00390625, %v613_v34 }
 0x290   : > { %v610_v40 = vpop.xlane.xlu1 %609 }
 0x291   : > { %v629_v43 = vmul.f32 0.00390625, %v614_v38  ;;  %v615_v44 = vadd.f32 %v610_v40, %v518_v39  ;;  %v632_v47 = vmul.f32 %v628_v42, %v628_v42  ;;  %v644_v2 = vsub.f32 %v936_v56, %v628_v42 }
 0x292   : > { %v612_v45 = vpop.xlane.xlu0 %611  ;;  %v668_v3 = vsub.f32 %v945_v57, %v628_v42  ;;  %v692_v4 = vsub.f32 %v954_v60, %v628_v42  ;;  %v716_v5 = vsub.f32 %v963_v59, %v628_v42 }
 0x293   : > { %v616_v46 = vadd.f32 %v612_v45, %v519_v41  ;;  %v630_v48 = vmul.f32 0.00390625, %v615_v44  ;;  %v633_v50 = vmul.f32 %v629_v43, %v629_v43  ;;  %v645_v7 = vsub.f32 %v937_v61, %v629_v43 }
 0x294   : > { %v669_v8 = vsub.f32 %v946_v62, %v629_v43  ;;  %v693_v10 = vsub.f32 %v955_v63, %v629_v43  ;;  %v717_v11 = vsub.f32 %v964_v0, %v629_v43 }
 0x295   : > { %v631_v51 = vmul.f32 0.00390625, %v616_v46  ;;  %v634_v52 = vsub.f32 %v630_v48, %v632_v47 }
 0x297   : > { %v635_v53 = vsub.f32 %v631_v51, %v633_v50  ;;  %v636_v54 = vadd.f32 1e-05, %v634_v52 }
 0x299   : > { %v637_v55 = vadd.f32 1e-05, %v635_v53  ;;  %1084 = vrsqrt.f32 %v636_v54 }
 0x29b   : > { %1086 = vrsqrt.f32 %v637_v55 }
 0x2a3   : > { %v1085_v6 = vpop.eup %1084 }
 0x2a4   : > { %v646_v13 = vmul.f32 %v1085_v6, %v644_v2  ;;  %v670_v14 = vmul.f32 %v1085_v6, %v668_v3  ;;  %v694_v49 = vmul.f32 %v1085_v6, %v692_v4  ;;  %v718_v15 = vmul.f32 %v1085_v6, %v716_v5 }
 0x2a5   : > { %v1087_v12 = vpop.eup %1086 }
 0x2a6   : > { %v647_v58 = vmul.f32 %v1087_v12, %v645_v7  ;;  %v671_v16 = vmul.f32 %v1087_v12, %v669_v8  ;;  %vm648_vm5 = vcmp.gt.f32.partialorder %v646_v13, 0.0  ;;  %v650_v1 = vmul.f32 0.2, %v646_v13 }
 0x2a7   : > { %v695_v9 = vmul.f32 %v1087_v12, %v693_v10  ;;  %v719_v17 = vmul.f32 %v1087_v12, %v717_v11  ;;  %vm672_vm6 = vcmp.gt.f32.partialorder %v670_v14, 0.0  ;;  %v674_v18 = vmul.f32 0.2, %v670_v14 }
 0x2a8   : > { %vm696_vm7 = vcmp.gt.f32.partialorder %v694_v49, 0.0  ;;  %v698_v19 = vmul.f32 0.2, %v694_v49  ;;  %vm720_vm8 = vcmp.gt.f32.partialorder %v718_v15, 0.0  ;;  %vm649_vm9 = vcmp.gt.f32.partialorder %v647_v58, 0.0 }
 0x2a9   : > { %v651_v20 = vmul.f32 0.2, %v647_v58  ;;  %v652_v21 = vsel %vm648_vm5, %v646_v13, %v650_v1  ;;  %v722_v22 = vmul.f32 0.2, %v718_v15  ;;  %vm673_vm10 = vcmp.gt.f32.partialorder %v671_v16, 0.0 }
 0x2aa   : > { %v675_v23 = vmul.f32 0.2, %v671_v16  ;;  %vm697_vm11 = vcmp.gt.f32.partialorder %v695_v9, 0.0  ;;  %v699_v25 = vmul.f32 0.2, %v695_v9  ;;  %vm721_vm12 = vcmp.gt.f32.partialorder %v719_v17, 0.0 }
 0x2ab   : > { %v653_v24 = vsel %vm649_vm9, %v647_v58, %v651_v20  ;;  %v676_v26 = vsel %vm672_vm6, %v670_v14, %v674_v18  ;;  %v723_v29 = vmul.f32 0.2, %v719_v17  ;;  %v700_v30 = vsel %vm696_vm7, %v694_v49, %v698_v19 }
 0x2ac   : > { %v941_v27 = vpack.c.bf16 %v653_v24, %v652_v21  ;;  %v677_v28 = vsel %vm673_vm10, %v671_v16, %v675_v23  ;;  %v701_v32 = vsel %vm697_vm11, %v695_v9, %v699_v25  ;;  %v724_v33 = vsel %vm720_vm8, %v718_v15, %v722_v22 }
 0x2ad   : > { %v950_v31 = vpack.c.bf16 %v677_v28, %v676_v26  ;;  %v959_v34 = vpack.c.bf16 %v701_v32, %v700_v30  ;;  %v725_v35 = vsel %vm721_vm12, %v719_v17, %v723_v29 }
 0x2ae   : > { %942 = vst [vmem:[%s214_s9] sm:$0xff] %v941_v27   ;;  %v968_v36 = vpack.c.bf16 %v725_v35, %v724_v33 }
 0x2af   : > { %974 = vst [vmem:[%s214_s9 + $0x8] sm:$0xff] %v950_v31   ;;  %976 = vst [vmem:[%s214_s9 + $0x10] sm:$0xff] %v959_v34  }
 0x2b0   : > { %978 = vst [vmem:[%s214_s9 + $0x18] sm:$0xff] %v968_v36  }
 0x2b1 PF: > { %s13_s14 = sadd.s32 1, %s1110_s14   ;;  %s1276_s12 = smov %s1106_s13 }
 0x2b2   : > { %p10_p5 = scmp.ge.s32.totalorder %s13_s14, 4   ;;  %s1277_s13 = smov %s1279_s15 }
 0x2b4   :  { %12 = sbr.rel (!%p10_p5) target bundleno = 2 (0x2), region = 71 }

</bundles_post_ra>
